<compile_context>
chip_gen: v7x
topology: tpu7x:2x2x1
jax: 0.10.0
libtpu: 0.0.40
codegen_flags: <defaults>
</compile_context>

<pallas_src>
import functools

import jax
import jax.numpy as jnp
import numpy as np
from jax import lax
from jax.experimental import pallas as pl
from jax.experimental.pallas import tpu as pltpu

EPS = 1e-5
_VMEM = pl.BlockSpec(memory_space=pltpu.MemorySpace.VMEM)
_ANY = pl.BlockSpec(memory_space=pl.ANY)


def _vmem_limit_bytes():
    """Generation-aware VMEM budget (v7x has only 64 MiB per TensorCore)."""
    try:
        kind = jax.devices()[0].device_kind.lower()
    except Exception:
        kind = ""
    if "v7" in kind:
        return 48 * 1024 * 1024
    if any(t in kind for t in ("v4", "v5", "v6")):
        return 100 * 1024 * 1024
    return 64 * 1024 * 1024


_CP = pltpu.CompilerParams(vmem_limit_bytes=_vmem_limit_bytes())


# --------------------------------------------------------------------------
# roll-direction probe: pin pltpu.roll's rotation direction empirically once
# so the depthwise shifts are provably correct regardless of convention.
# --------------------------------------------------------------------------
_ROLL_MATCHES_JNP = None


def _roll_matches_jnp():
    global _ROLL_MATCHES_JNP
    if _ROLL_MATCHES_JNP is None:
        def k(x_ref, o_ref):
            o_ref[...] = pltpu.roll(x_ref[...], 1, axis=0)

        x = jnp.broadcast_to(jnp.arange(8, dtype=jnp.float32)[:, None], (8, 128))
        y = pl.pallas_call(
            k, out_shape=jax.ShapeDtypeStruct((8, 128), jnp.float32),
            in_specs=[_VMEM], out_specs=_VMEM, compiler_params=_CP)(x)
        # jnp.roll semantics: element 0 moves to index 1.
        _ROLL_MATCHES_JNP = bool(y[1, 0] == 0.0)
    return _ROLL_MATCHES_JNP


def _row_shift(off, size):
    """Static amount s.t. pltpu.roll(y, amt, axis=0)[r] == y[(r + off) % size]."""
    amt = (-off) if _roll_matches_jnp() else off
    return amt % size


# --------------------------------------------------------------------------
# fused MBConv kernel
# --------------------------------------------------------------------------
def _bn(y, g, b, relu):
    """Training-mode BatchNorm over rows (axis 0), biased variance, f32."""
    mean = jnp.mean(y, axis=0, keepdims=True)
    yc = y - mean
    var = jnp.mean(yc * yc, axis=0, keepdims=True)
    out = yc * lax.rsqrt(var + EPS) * g + b
    return jnp.maximum(out, 0.0) if relu else out


def _mbconv_kernel(*refs, N, H, W, n_in, has_fc):
    """Whole MBConv block on a flattened (N*H*W, C) tile; weights streamed
    HBM->VMEM with manual async copies so the DMA overlaps compute."""
    i = 0
    xs = refs[i:i + n_in]; i += n_in
    wes_hbm = refs[i:i + n_in]; i += n_in
    dw_hbm, s1_hbm, s2_hbm, wp_hbm = refs[i:i + 4]; i += 4
    g1, b1, g2, b2, sb1, sb2, g3, b3 = refs[i:i + 8]; i += 8
    if has_fc:
        fc_w, fc_b = refs[i:i + 2]; i += 2
    o_ref = refs[i]; i += 1
    wes_v = refs[i:i + n_in]; i += n_in
    dw_v, s1_v, s2_v, wp_v = refs[i:i + 4]; i += 4
    sem = refs[i]

    R = N * H * W
    HW = H * W

    # ---- kick off all weight DMAs; waits are placed just before each use ----
    cps_we = [pltpu.make_async_copy(wes_hbm[k], wes_v[k], sem.at[k])
              for k in range(n_in)]
    cp_dw = pltpu.make_async_copy(dw_hbm, dw_v, sem.at[n_in])
    cp_s1 = pltpu.make_async_copy(s1_hbm, s1_v, sem.at[n_in + 1])
    cp_s2 = pltpu.make_async_copy(s2_hbm, s2_v, sem.at[n_in + 2])
    cp_wp = pltpu.make_async_copy(wp_hbm, wp_v, sem.at[n_in + 3])
    for c in cps_we:
        c.start()
    cp_dw.start(); cp_s1.start(); cp_s2.start(); cp_wp.start()

    # ---- expand: 1x1 conv (fused channel-concat), bf16 operands / f32 acc ---
    cps_we[0].wait()
    w0 = wes_v[0][...]
    wdt = w0.dtype
    y = jnp.dot(xs[0][...].astype(wdt), w0, preferred_element_type=jnp.float32)
    for k in range(1, n_in):
        cps_we[k].wait()
        y = y + jnp.dot(xs[k][...].astype(wdt), wes_v[k][...],
                        preferred_element_type=jnp.float32)
    y = _bn(y, g1[...], b1[...], relu=True)

    # ---- depthwise 3x3, stride 1, pad 1, via sublane rolls + masks ----------
    cp_dw.wait()
    row = lax.broadcasted_iota(jnp.int32, (R, 1), 0)
    jj = row % W
    ii = (row // W) % H
    acc = None
    for di in range(3):
        if H == 1 and di != 1:
            continue
        for dj in range(3):
            if W == 1 and dj != 1:
                continue
            off = (di - 1) * W + (dj - 1)
            shifted = y if off == 0 else pltpu.roll(y, _row_shift(off, R), axis=0)
            conds = []
            if di == 0:
                conds.append(ii >= 1)
            elif di == 2:
                conds.append(ii < H - 1)
            if dj == 0:
                conds.append(jj >= 1)
            elif dj == 2:
                conds.append(jj < W - 1)
            if conds:
                valid = conds[0]
                for c in conds[1:]:
                    valid = valid & c
                shifted = jnp.where(valid, shifted, 0.0)
            term = shifted * dw_v[di * 3 + dj]            # (1, mid) tap broadcast
            acc = term if acc is None else acc + term
    d = _bn(acc, g2[...], b2[...], relu=True)

    # ---- squeeze-excite, vectorized over the batch ---------------------------
    cp_s1.wait(); cp_s2.wait()
    inv_hw = jnp.float32(1.0 / HW)
    # pooling matrix pm[n, r] = (r // HW == n) / HW   -> pooled = pm @ d
    pm = jnp.where(
        (lax.broadcasted_iota(jnp.int32, (N, R), 1) // HW)
        == lax.broadcasted_iota(jnp.int32, (N, R), 0),
        inv_hw, jnp.float32(0.0))
    pooled = jnp.dot(pm, d, preferred_element_type=jnp.float32)       # (N, mid)
    h = jnp.dot(pooled.astype(wdt), s1_v[...],
                preferred_element_type=jnp.float32) + sb1[...]
    h = jnp.maximum(h, 0.0)
    lo = jnp.dot(h.astype(wdt), s2_v[...],
                 preferred_element_type=jnp.float32) + sb2[...]
    gate = pl.reciprocal(1.0 + jnp.exp(-lo), approx=True)             # sigmoid, EUP
    # broadcast gate per sample back to rows with one tiny (R,N)x(N,mid) matmul
    sel = jnp.where(
        (row // HW) == lax.broadcasted_iota(jnp.int32, (R, N), 1),
        jnp.float32(1.0), jnp.float32(0.0))
    gate_rows = jnp.dot(sel, gate, preferred_element_type=jnp.float32)
    d = d * gate_rows

    # ---- project + BN (no activation) (+ optional fused final fc) -----------
    cp_wp.wait()
    p = jnp.dot(d.astype(wdt), wp_v[...], preferred_element_type=jnp.float32)
    p = _bn(p, g3[...], b3[...], relu=False)
    if has_fc:
        p = jnp.dot(p, fc_w[...], preferred_element_type=jnp.float32) + fc_b[...]
    o_ref[...] = p.astype(o_ref.dtype)


def mbconv(x, p, x2=None, fc=None):
    """Fused MBConv2d forward, NHWC in/out (bf16 activations out).

    `x2` is an optional second input that is logically channel-concatenated
    with `x` (torch.cat fused into the expand matmul via pre-split weights).
    `fc` optionally fuses the final 1x1 conv (lane-padded) after BN3."""
    N, H, W, C1 = x.shape
    R = N * H * W
    xs = [x.reshape(R, C1)]
    if x2 is None:
        wes = [p["expand_w"]]
    else:
        xs.append(x2.reshape(R, x2.shape[-1]))
        wes = [p["expand_w_a"], p["expand_w_b"]]
    n_in = len(xs)
    cout = p["proj_w"].shape[1]
    has_fc = fc is not None
    out_cols = fc["w"].shape[1] if has_fc else cout
    out_dtype = jnp.float32 if has_fc else jnp.bfloat16

    ins, specs = [], []
    for a in xs:
        ins.append(a); specs.append(_VMEM)
    for w in wes:
        ins.append(w); specs.append(_ANY)
    for w in (p["dw_w"], p["se_w1"], p["se_w2"], p["proj_w"]):
        ins.append(w); specs.append(_ANY)
    for a in (p["bn1_g"], p["bn1_b"], p["bn2_g"], p["bn2_b"],
              p["se_b1"], p["se_b2"], p["bn3_g"], p["bn3_b"]):
        ins.append(a); specs.append(_VMEM)
    if has_fc:
        ins.append(fc["w"]); specs.append(_VMEM)
        ins.append(fc["b"]); specs.append(_VMEM)

    scratch = ([pltpu.VMEM(w.shape, w.dtype) for w in wes]
               + [pltpu.VMEM(p["dw_w"].shape, p["dw_w"].dtype),
                  pltpu.VMEM(p["se_w1"].shape, p["se_w1"].dtype),
                  pltpu.VMEM(p["se_w2"].shape, p["se_w2"].dtype),
                  pltpu.VMEM(p["proj_w"].shape, p["proj_w"].dtype),
                  pltpu.SemaphoreType.DMA((n_in + 4,))])

    out = pl.pallas_call(
        functools.partial(_mbconv_kernel, N=N, H=H, W=W, n_in=n_in, has_fc=has_fc),
        out_shape=jax.ShapeDtypeStruct((R, out_cols), out_dtype),
        in_specs=specs,
        out_specs=_VMEM,
        scratch_shapes=scratch,
        compiler_params=_CP,
    )(*ins)
    return out.reshape(N, H, W, out_cols)


# --------------------------------------------------------------------------
# small matmul+bias kernel (ConvTranspose2d 2x2 as a matmul)
# --------------------------------------------------------------------------
def _matmul_bias_kernel(x_ref, w_ref, b_ref, o_ref):
    y = jnp.dot(x_ref[...].astype(w_ref.dtype), w_ref[...],
                preferred_element_type=jnp.float32) + b_ref[...]
    o_ref[...] = y.astype(o_ref.dtype)


def _matmul_bias(xf, w, b2d, out_dtype):
    return pl.pallas_call(
        _matmul_bias_kernel,
        out_shape=jax.ShapeDtypeStruct((xf.shape[0], w.shape[1]), out_dtype),
        in_specs=[_VMEM] * 3,
        out_specs=_VMEM,
        compiler_params=_CP,
    )(xf, w, b2d)


def conv_transpose2x2(x, wf, b4):
    """ConvTranspose2d(k=2, s=2). wf: (Cin, 4*Cout) bf16 with the 4 groups in
    (a, b) row-major order over the 2x2 output window; b4: (1, 4*Cout) f32."""
    N, H, W, Cin = x.shape
    Cout = wf.shape[1] // 4
    y = _matmul_bias(x.reshape(N * H * W, Cin), wf, b4, jnp.bfloat16)  # (NHW, 4*Cout)
    y = y.reshape(N, H, W, 2, 2, Cout)
    # TODO(synk): 2x2 pixel interleave kept as XLA layout glue (tiny tensors).
    return jnp.transpose(y, (0, 1, 3, 2, 4, 5)).reshape(N, 2 * H, 2 * W, Cout)


def maxpool2(x):
    """MaxPool2d(2) on NHWC — layout glue, plain JAX/XLA."""
    N, H, W, C = x.shape
    return jnp.max(x.reshape(N, H // 2, 2, W // 2, 2, C), axis=(2, 4))


# --------------------------------------------------------------------------
# parameters
# --------------------------------------------------------------------------
def init_mbconv(key, cin, cout, expand_ratio=2, se_ratio=0.3, concat_split=None):
    mid = cin * expand_ratio
    se_c = max(1, int(cin * se_ratio))
    se_pad = ((se_c + 127) // 128) * 128          # lane-align the SE hidden width
    ks = jax.random.split(key, 10)
    nrm = jax.random.normal
    bf16 = jnp.bfloat16

    expand_w = (nrm(ks[0], (cin, mid), jnp.float32) / np.sqrt(cin)).astype(bf16)
    se_w1 = jnp.zeros((mid, se_pad), jnp.float32).at[:, :se_c].set(
        nrm(ks[6], (mid, se_c), jnp.float32) / np.sqrt(mid)).astype(bf16)
    se_w2 = jnp.zeros((se_pad, mid), jnp.float32).at[:se_c, :].set(
        nrm(ks[7], (se_c, mid), jnp.float32) / np.sqrt(se_c)).astype(bf16)

    p = {
        "bn1_g": 1.0 + 0.1 * nrm(ks[1], (1, mid), jnp.float32),
        "bn1_b": 0.1 * nrm(ks[2], (1, mid), jnp.float32),
        "dw_w": nrm(ks[3], (9, 1, mid), jnp.float32) / 3.0,
        "bn2_g": 1.0 + 0.1 * nrm(ks[4], (1, mid), jnp.float32),
        "bn2_b": 0.1 * nrm(ks[5], (1, mid), jnp.float32),
        "se_w1": se_w1,
        "se_b1": jnp.zeros((1, se_pad), jnp.float32),
        "se_w2": se_w2,
        "se_b2": jnp.zeros((1, mid), jnp.float32),
        "proj_w": (nrm(ks[8], (mid, cout), jnp.float32) / np.sqrt(mid)).astype(bf16),
        "bn3_g": 1.0 + 0.1 * nrm(ks[9], (1, cout), jnp.float32),
        "bn3_b": jnp.zeros((1, cout), jnp.float32),
    }
    if concat_split is None:
        p["expand_w"] = expand_w
    else:
        # decoder torch.cat fused: pre-split the expand weight at init time
        p["expand_w_a"] = expand_w[:concat_split]
        p["expand_w_b"] = expand_w[concat_split:]
    return p


def init_unpool(key, c):
    k1, k2 = jax.random.split(key)
    w = jax.random.normal(k1, (c, c, 2, 2), jnp.float32) / np.sqrt(4 * c)
    b = 0.01 * jax.random.normal(k2, (c,), jnp.float32)
    wf = jnp.transpose(w, (0, 2, 3, 1)).reshape(c, 4 * c).astype(jnp.bfloat16)
    b4 = jnp.tile(b, 4).reshape(1, 4 * c)
    return {"w": wf, "b4": b4}


_MBCONV_CFG = [
    ("enc1_1", 3, 64, None), ("enc1_2", 64, 64, None),
    ("enc2_1", 64, 128, None), ("enc2_2", 128, 128, None),
    ("enc3_1", 128, 256, None), ("enc3_2", 256, 256, None),
    ("enc4_1", 256, 512, None), ("enc4_2", 512, 512, None),
    ("enc5_1", 512, 1024, None), ("enc5_2", 1024, 1024, None),
    ("dec5_1", 1024, 512, None),
    ("dec4_2", 1024, 512, 512), ("dec4_1", 512, 256, None),
    ("dec3_2", 512, 256, 256), ("dec3_1", 256, 128, None),
    ("dec2_2", 256, 128, 128), ("dec2_1", 128, 64, None),
    ("dec1_2", 128, 64, 64), ("dec1_1", 64, 64, None),
]
_UNPOOL_CFG = [("unpool4", 512), ("unpool3", 256), ("unpool2", 128), ("unpool1", 64)]


def init_unet(key):
    params = {}
    keys = jax.random.split(key, len(_MBCONV_CFG) + len(_UNPOOL_CFG) + 1)
    for (name, cin, cout, split), k in zip(_MBCONV_CFG, keys[:len(_MBCONV_CFG)]):
        params[name] = init_mbconv(k, cin, cout, concat_split=split)
    for (name, c), k in zip(_UNPOOL_CFG, keys[len(_MBCONV_CFG):-1]):
        params[name] = init_unpool(k, c)
    k1, k2 = jax.random.split(keys[-1])
    # final 1x1 fc, zero-padded to 128 output lanes (fused into dec1_1's call)
    fc_w = jnp.zeros((64, 128), jnp.float32).at[:, :2].set(
        jax.random.normal(k1, (64, 2), jnp.float32) / np.sqrt(64))
    fc_b = jnp.zeros((1, 128), jnp.float32).at[:, :2].set(
        0.01 * jax.random.normal(k2, (1, 2), jnp.float32))
    params["fc"] = {"w": fc_w, "b": fc_b}
    return params


# --------------------------------------------------------------------------
# forward
# --------------------------------------------------------------------------
def unet_forward(x_nchw, params):
    x = jnp.transpose(x_nchw, (0, 2, 3, 1))  # NCHW -> NHWC

    enc1_1 = mbconv(x, params["enc1_1"])
    enc1_2 = mbconv(enc1_1, params["enc1_2"])
    pool1 = maxpool2(enc1_2)
    enc2_1 = mbconv(pool1, params["enc2_1"])
    enc2_2 = mbconv(enc2_1, params["enc2_2"])
    pool2 = maxpool2(enc2_2)
    enc3_1 = mbconv(pool2, params["enc3_1"])
    enc3_2 = mbconv(enc3_1, params["enc3_2"])
    pool3 = maxpool2(enc3_2)
    enc4_1 = mbconv(pool3, params["enc4_1"])
    enc4_2 = mbconv(enc4_1, params["enc4_2"])
    pool4 = maxpool2(enc4_2)
    enc5_1 = mbconv(pool4, params["enc5_1"])
    enc5_2 = mbconv(enc5_1, params["enc5_2"])

    dec5_1 = mbconv(enc5_2, params["dec5_1"])
    unpool4 = conv_transpose2x2(dec5_1, params["unpool4"]["w"], params["unpool4"]["b4"])
    dec4_2 = mbconv(unpool4, params["dec4_2"], x2=enc4_2)   # fused torch.cat
    dec4_1 = mbconv(dec4_2, params["dec4_1"])
    unpool3 = conv_transpose2x2(dec4_1, params["unpool3"]["w"], params["unpool3"]["b4"])
    dec3_2 = mbconv(unpool3, params["dec3_2"], x2=enc3_2)
    dec3_1 = mbconv(dec3_2, params["dec3_1"])
    unpool2 = conv_transpose2x2(dec3_1, params["unpool2"]["w"], params["unpool2"]["b4"])
    dec2_2 = mbconv(unpool2, params["dec2_2"], x2=enc2_2)
    dec2_1 = mbconv(dec2_2, params["dec2_1"])
    unpool1 = conv_transpose2x2(dec2_1, params["unpool1"]["w"], params["unpool1"]["b4"])
    dec1_2 = mbconv(unpool1, params["dec1_2"], x2=enc1_2)

    # dec1_1 with the final fc fused into its project stage (lane-padded to 128)
    fc_pad = mbconv(dec1_2, params["dec1_1"], fc=params["fc"])   # (N,H,W,128) f32
    fc = fc_pad[..., :2]
    return jnp.transpose(fc, (0, 3, 1, 2))  # NHWC -> NCHW


if __name__ == "__main__":
    key = jax.random.PRNGKey(0)
    kx, kp = jax.random.split(key)
    # Input matching the PyTorch module: NCHW, 3 channels, 16x16 (4 pools -> 1x1).
    x = jax.random.normal(kx, (2, 3, 16, 16), jnp.float32)
    params = init_unet(kp)

    _roll_matches_jnp()  # resolve the roll-direction probe outside of jit tracing

    fwd = jax.jit(unet_forward)
    out = jax.block_until_ready(fwd(x, params))

    assert out.shape == (2, 2, 16, 16), out.shape
    assert out.dtype == jnp.float32
    assert bool(jnp.all(jnp.isfinite(out)))
    print("KERNEL_OK")
</pallas_src>

<mosaic_0001>
module attributes {stable_mosaic.version = 11 : i64} {
  func.func @k(%arg0: memref<8x128xf32, #tpu.memory_space<vmem>>, %arg1: memref<8x128xf32, #tpu.memory_space<vmem>>) attributes {dimension_semantics = [], scalar_prefetch = 0 : i64, scratch_operands = 0 : i64, tpu.core_type = #tpu.core_type<tc>} {
    %c0 = arith.constant 0 : index
    %c0_0 = arith.constant 0 : index
    %0 = vector.load %arg0[%c0, %c0_0] : memref<8x128xf32, #tpu.memory_space<vmem>>, vector<8x128xf32>
    %c1_i32 = arith.constant 1 : i32
    %1 = tpu.dynamic_rotate %0 by %c1_i32 dim 0 : vector<8x128xf32>, i32 -> vector<8x128xf32>
    %c0_1 = arith.constant 0 : index
    %c0_2 = arith.constant 0 : index
    %2 = vector.load %arg1[%c0_1, %c0_2] : memref<8x128xf32, #tpu.memory_space<vmem>>, vector<8x128xf32>
    tpu.vector_store %arg1[%c0_1, %c0_2], %1 {strides = array<i32>} : memref<8x128xf32, #tpu.memory_space<vmem>>, vector<8x128xf32>,
    return
  }
}

</mosaic_0001>

<bundles_post_ra>
// kernel: tpu_custom_call.1
= control target key start
LH: loop header
LB: loop body
LE: loop exit
PB: predicated region body
PF: predicated region fallthrough
CT: control target
= control target key end

     0   :  { %6 = vsyncpa [#allocation3], 0  ;;  %s125_s0 = inlined_call_operand.hbm [shape: f32[8,128], index: 0, kind: input, shape index: {}]   ;;  %s126_s1 = inlined_call_operand.hbm [shape: f32[8,128], index: 1, kind: output, shape index: {}]  }
   0x1   :  { %7 = vsyncpa [#allocation4], 0  ;;  %s89_s6 = smov [#allocation2]   ;;  %s41_s10 = scalar_lea.hbm %s125_s0, 128 }
   0x2   :  { %s14_s7 = sshll.u32 %s89_s6, 4  ;;  %p42_p0 = scmp.ne.s32.totalorder %s125_s0, %s41_s10  ;;  %s15_s7 = int_to_ptr.vmem [resolvable:$true] %s14_s7 }
   0x3   :  { %p45_p1 = scmp.lt.u32.totalorder %s41_s10, %s125_s0 }
   0x5   :  { %p47_p2 = pnand %p45_p1, %p42_p0 }
   0x7   :  { %50 = shalt.err (!%p47_p2)
}
   0x8   :  { %s51_s15 = scalar_lea.vmem %s15_s7, 128  ;;  %p56_p4 = scmp.lt.s32.totalorder %s15_s7, %s15_s7 }
   0x9   :  { %p52_p3 = scmp.ne.s32.totalorder %s15_s7, %s51_s15  ;;  %p57_p5 = scmp.lt.s32.totalorder %s51_s15, %s51_s15 }
   0xb   :  { %p58_p6 = por %p57_p5, %p56_p4 }
   0xd   :  { %p59_p7 = pnand %p58_p6, %p52_p3 }
   0xf   :  { %62 = shalt.err (!%p59_p7)
}
  0x10   :  { %17 = dma.hbm_to_vmem [thread:$0]  %s125_s0, 128, %s15_s7, [#allocation3]  }
  0x11   :  { %85 = dma.done.wait [#allocation3], 128  }
  0x12   :  { %86 = vsyncadd [#allocation3], 4294967168  ;;  %s90_s18 = smov [#allocation5]   ;;  %v21_v0 = vld [vmem:[#allocation2] sm:$0xff] }
  0x13   :  { %s30_s19 = sshll.u32 %s90_s18, 4  ;;  %v22_v1 = vrot.slane %v21_v0, 7  ;;  %s31_s19 = int_to_ptr.vmem [resolvable:$true] %s30_s19 }
  0x14   :  { %s63_s20 = scalar_lea.vmem %s31_s19, 128  ;;  %p68_p9 = scmp.lt.s32.totalorder %s31_s19, %s31_s19 }
  0x15   :  { %23 = vst [vmem:[#allocation5] sm:$0xff] %v22_v1  ;;  %p64_p8 = scmp.ne.s32.totalorder %s31_s19, %s63_s20  ;;  %p69_p10 = scmp.lt.s32.totalorder %s63_s20, %s63_s20 }
  0x17   :  { %p70_p11 = por %p69_p10, %p68_p9 }
  0x19   :  { %p71_p12 = pnand %p70_p11, %p64_p8 }
  0x1b   :  { %74 = shalt.err (!%p71_p12)
}
  0x1c   :  { %s75_s23 = scalar_lea.hbm %s126_s1, 128 }
  0x1d   :  { %p76_p13 = scmp.ne.s32.totalorder %s126_s1, %s75_s23  ;;  %p79_p0 = scmp.lt.u32.totalorder %s75_s23, %s126_s1 }
  0x1f   :  { %p81_p1 = pnand %p79_p0, %p76_p13 }
  0x21   :  { %84 = shalt.err (!%p81_p1)
}
  0x22   :  { %33 = dma.vmem_to_hbm [thread:$0]  %s31_s19, 128, %s126_s1, [#allocation4]  }
  0x23   :  { %87 = dma.done.wait [#allocation4], 128  }
  0x24   :  { %88 = vsyncadd [#allocation4], 4294967168 }
  0x25   :  { %37 = vsyncpa [#allocation3], 1 }
  0x26   :  { %38 = vsyncpa [#allocation4], 1 }

</bundles_post_ra>
